<compile_context>
chip_gen: v5e
topology: v5e:2x2
jax: 0.10.0
libtpu: 0.0.40
codegen_flags: <defaults>
</compile_context>

<pallas_src>
import jax
import jax.numpy as jnp
from jax.experimental import pallas as pl
from jax.experimental.pallas import tpu as pltpu

# ----------------------------- problem sizes -------------------------------
B = 2      # batch
N = 8      # nodes per graph (seq)
K = 4      # neighbors per node
V = 16     # vocabulary / number of graph nodes (embedding.shape[0])
D = 32     # embedding_size
PAD_IDX = 0  # stoi[PADDING_TOKEN]


# ------------------------------ Pallas kernel ------------------------------
def _fake_style_graph_kernel(idx_ref, tbl_ref, wb_ref, out_ref):
    # idx_ref : [B*N, 1+K] int32   (node | K neighbors)
    # tbl_ref : [V, D+V+1] f32     (embedding | adjacency | aggregate_rate)
    # wb_ref  : [D+1, 2]   f32     (last.weight.T | last.bias)
    # out_ref : [B, 2]     f32
    BN = B * N

    idx = idx_ref[...]                                          # [BN, 1+K]
    nodes = idx[:, 0:1]                                         # [BN, 1]
    nbrs = idx[:, 1:1 + K]                                      # [BN, K]
    tbl = tbl_ref[...]                                          # [V, D+V+1]

    # --- single one-hot gather of (embedding | adjacency row | rate) -------
    vocab_iota = jax.lax.broadcasted_iota(jnp.int32, (BN, V), 1)
    nodes_oh = (nodes == vocab_iota).astype(jnp.float32)        # [BN, V]
    gathered = jnp.dot(nodes_oh, tbl,
                       preferred_element_type=jnp.float32)      # [BN, D+V+1]
    nodes_emb = gathered[:, :D]                                 # [BN, D]
    adj_rows = gathered[:, D:D + V]                             # [BN, V]
    msg_rate = gathered[:, D + V:D + V + 1]                     # [BN, 1]

    pad_mask = nodes == PAD_IDX                                 # [BN, 1]

    # --- all K neighbors in one MXU pass ------------------------------------
    # TODO(synk): dropout omitted (eval-mode identity); training-mode dropout
    # would need pltpu.prng_seed / prng_random_bits.
    vocab_iota3 = jax.lax.broadcasted_iota(jnp.int32, (BN, K, V), 2)
    nbr_oh = (nbrs[:, :, None] == vocab_iota3).astype(jnp.float32)  # [BN,K,V]
    nbr_emb = jnp.dot(nbr_oh.reshape(BN * K, V), tbl[:, :D],
                      preferred_element_type=jnp.float32)       # [BN*K, D]
    nbr_emb = nbr_emb.reshape(BN, K, D)                         # [BN, K, D]

    # h[bn, k] = adjacency[node, neighbor_k], masked to 0 where node is PAD
    h = jnp.sum(adj_rows[:, None, :] * nbr_oh, axis=-1)         # [BN, K]
    h = jnp.where(pad_mask, 0.0, h)                             # [BN, K]

    m_max = jnp.max(h[:, :, None] * nbr_emb, axis=1)            # [BN, D]

    # --- aggregate ----------------------------------------------------------
    msg_rate = jnp.where(pad_mask, 0.0, msg_rate)               # [BN, 1]
    ori_rate = jnp.where(pad_mask, 0.0, 1.0 - msg_rate)         # [BN, 1]
    reps = msg_rate * m_max + ori_rate * nodes_emb              # [BN, D]

    # sum over the N dimension (sublane regroup + XLU reduction)
    rep_sum = jnp.sum(reps.reshape(B, N, D), axis=1)            # [B, D]

    # final linear layer (bias folded into wb)
    w = wb_ref[:D, :]                                           # [D, 2]
    bias = wb_ref[D:D + 1, :]                                   # [1, 2]
    out_ref[...] = jnp.dot(rep_sum, w,
                           preferred_element_type=jnp.float32) + bias


def fake_style_graph_forward(nodes, neighbors, params):
    """nodes: [B, N] int32, neighbors: [B, N, K] int32 -> [B, 2] f32."""
    emb, adj, rate, w, b = params
    BN = B * N

    # coalesce inputs: 3 operands instead of 7
    idx_packed = jnp.concatenate(
        [nodes.reshape(BN, 1), neighbors.reshape(BN, K)], axis=1
    ).astype(jnp.int32)                                         # [BN, 1+K]
    table = jnp.concatenate(
        [emb, adj, rate.reshape(V, 1)], axis=1
    ).astype(jnp.float32)                                       # [V, D+V+1]
    wb = jnp.concatenate(
        [w.T, b.reshape(1, 2)], axis=0
    ).astype(jnp.float32)                                       # [D+1, 2]

    vmem = pl.BlockSpec(memory_space=pltpu.MemorySpace.VMEM)
    return pl.pallas_call(
        _fake_style_graph_kernel,
        out_shape=jax.ShapeDtypeStruct((B, 2), jnp.float32),
        in_specs=[vmem, vmem, vmem],
        out_specs=vmem,
    )(idx_packed, table, wb)


# ----------------------- deterministic parameter init ----------------------
def init_params(key):
    k_emb, k_adj, k_rate, k_w, k_b = jax.random.split(key, 5)
    embedding = jax.random.normal(k_emb, (V, D), jnp.float32)
    # xavier_uniform_(gain=0.5) on a [V, V] matrix
    bound = 0.5 * (6.0 / (V + V)) ** 0.5
    adjacency = jax.random.uniform(k_adj, (V, V), jnp.float32, -bound, bound)
    aggregate_rate = jax.random.uniform(k_rate, (V,), jnp.float32)
    # nn.Linear(D, 2) default init: U(-1/sqrt(D), 1/sqrt(D))
    lb = 1.0 / (D ** 0.5)
    last_w = jax.random.uniform(k_w, (2, D), jnp.float32, -lb, lb)
    last_b = jax.random.uniform(k_b, (2,), jnp.float32, -lb, lb)
    return embedding, adjacency, aggregate_rate, last_w, last_b


# ------------------------------ pure-JAX reference --------------------------
def reference_forward(nodes, neighbors, params):
    emb, adj, rate, w, b = params
    nodes_emb = emb[nodes]                                  # [B, N, D]
    nbrs_emb = emb[neighbors]                               # [B, N, K, D]
    temp_nodes = jnp.broadcast_to(nodes[:, :, None], neighbors.shape)
    h = adj[temp_nodes, neighbors]                          # [B, N, K]
    h = jnp.where(temp_nodes == PAD_IDX, 0.0, h)
    M = h[..., None] * nbrs_emb                             # [B, N, K, D]
    M = jnp.max(M, axis=2)                                  # [B, N, D]
    msg = jnp.where(nodes == PAD_IDX, 0.0, rate[nodes])     # [B, N]
    ori = jnp.where(nodes == PAD_IDX, 0.0, 1.0 - msg)
    reps = msg[..., None] * M + ori[..., None] * nodes_emb  # [B, N, D]
    reps = jnp.sum(reps, axis=1)                            # [B, D]
    return reps @ w.T + b                                   # [B, 2]


if __name__ == "__main__":
    key = jax.random.PRNGKey(0)
    k_params, k_nodes, k_nbrs = jax.random.split(key, 3)
    params = init_params(k_params)

    nodes = jax.random.randint(k_nodes, (B, N), 0, V, dtype=jnp.int32)
    neighbors = jax.random.randint(k_nbrs, (B, N, K), 0, V, dtype=jnp.int32)
    # force a few PAD entries so the masking paths are exercised
    nodes = nodes.at[0, -2:].set(PAD_IDX)
    neighbors = neighbors.at[1, 0, 0].set(PAD_IDX)

    out = jax.block_until_ready(fake_style_graph_forward(nodes, neighbors, params))
    ref = jax.block_until_ready(reference_forward(nodes, neighbors, params))

    assert out.shape == (B, 2)
    assert jnp.allclose(out, ref, rtol=1e-4, atol=1e-4), (out, ref)
    print("KERNEL_OK")
</pallas_src>

<mosaic_0001>
module attributes {stable_mosaic.version = 11 : i64} {
  func.func @_fake_style_graph_kernel(%arg0: memref<16x5xi32, #tpu.memory_space<vmem>>, %arg1: memref<16x49xf32, #tpu.memory_space<vmem>>, %arg2: memref<33x2xf32, #tpu.memory_space<vmem>>, %arg3: memref<2x2xf32, #tpu.memory_space<vmem>>) attributes {dimension_semantics = [], scalar_prefetch = 0 : i64, scratch_operands = 0 : i64, tpu.core_type = #tpu.core_type<tc>} {
    %c0 = arith.constant 0 : index
    %c0_0 = arith.constant 0 : index
    %0 = vector.load %arg0[%c0, %c0_0] : memref<16x5xi32, #tpu.memory_space<vmem>>, vector<16x5xi32>
    %1 = vector.extract_strided_slice %0 {offsets = [0, 0], sizes = [16, 1], strides = [1, 1]} : vector<16x5xi32> to vector<16x1xi32>
    %2 = vector.extract_strided_slice %0 {offsets = [0, 1], sizes = [16, 4], strides = [1, 1]} : vector<16x5xi32> to vector<16x4xi32>
    %c0_1 = arith.constant 0 : index
    %c0_2 = arith.constant 0 : index
    %3 = vector.load %arg1[%c0_1, %c0_2] : memref<16x49xf32, #tpu.memory_space<vmem>>, vector<16x49xf32>
    %4 = tpu.iota {dimensions = array<i32: 1>} : vector<16x16xi32>
    %5 = vector.broadcast %1 : vector<16x1xi32> to vector<16x16xi32>
    %6 = arith.cmpi eq, %5, %4 : vector<16x16xi32>
    %7 = arith.extui %6 : vector<16x16xi1> to vector<16x16xi32>
    %8 = arith.sitofp %7 : vector<16x16xi32> to vector<16x16xf32>
    %cst = arith.constant dense<0.000000e+00> : vector<16x49xf32>
    %9 = tpu.matmul %8, %3, %cst {dimension_numbers = #tpu.dot_dimension_numbers<[1], [0], [0], [1], [0, 0, 1, 1], [], []>} : vector<16x16xf32>, vector<16x49xf32>, vector<16x49xf32> -> vector<16x49xf32>
    %10 = vector.extract_strided_slice %9 {offsets = [0, 0], sizes = [16, 32], strides = [1, 1]} : vector<16x49xf32> to vector<16x32xf32>
    %11 = vector.extract_strided_slice %9 {offsets = [0, 32], sizes = [16, 16], strides = [1, 1]} : vector<16x49xf32> to vector<16x16xf32>
    %12 = vector.extract_strided_slice %9 {offsets = [0, 48], sizes = [16, 1], strides = [1, 1]} : vector<16x49xf32> to vector<16x1xf32>
    %c0_i32 = arith.constant 0 : i32
    %13 = vector.broadcast %c0_i32 : i32 to vector<16x1xi32>
    %14 = arith.cmpi eq, %1, %13 : vector<16x1xi32>
    %15 = tpu.iota {dimensions = array<i32: 2>} : vector<16x4x16xi32>
    %16 = vector.shape_cast %2 : vector<16x4xi32> to vector<16x4x1xi32>
    %17 = vector.broadcast %16 : vector<16x4x1xi32> to vector<16x4x16xi32>
    %18 = arith.cmpi eq, %17, %15 : vector<16x4x16xi32>
    %19 = arith.extui %18 : vector<16x4x16xi1> to vector<16x4x16xi32>
    %20 = arith.sitofp %19 : vector<16x4x16xi32> to vector<16x4x16xf32>
    %21 = vector.shape_cast %20 : vector<16x4x16xf32> to vector<64x16xf32>
    %22 = vector.extract_strided_slice %3 {offsets = [0, 0], sizes = [16, 32], strides = [1, 1]} : vector<16x49xf32> to vector<16x32xf32>
    %cst_3 = arith.constant dense<0.000000e+00> : vector<64x32xf32>
    %23 = tpu.matmul %21, %22, %cst_3 {dimension_numbers = #tpu.dot_dimension_numbers<[1], [0], [0], [1], [0, 0, 1, 1], [], []>} : vector<64x16xf32>, vector<16x32xf32>, vector<64x32xf32> -> vector<64x32xf32>
    %24 = vector.shape_cast %23 : vector<64x32xf32> to vector<16x4x32xf32>
    %25 = vector.shape_cast %11 : vector<16x16xf32> to vector<16x1x16xf32>
    %26 = vector.broadcast %25 : vector<16x1x16xf32> to vector<16x4x16xf32>
    %27 = arith.mulf %26, %20 : vector<16x4x16xf32>
    %cst_4 = arith.constant dense<0.000000e+00> : vector<16x4xf32>
    %28 = vector.multi_reduction <add>, %27, %cst_4 [2] : vector<16x4x16xf32> to vector<16x4xf32>
    %cst_5 = arith.constant 0.000000e+00 : f32
    %29 = vector.shape_cast %14 : vector<16x1xi1> to vector<16x1xi1>
    %30 = vector.broadcast %29 : vector<16x1xi1> to vector<16x4xi1>
    %31 = vector.broadcast %cst_5 : f32 to vector<16x4xf32>
    %32 = arith.select %30, %31, %28 : vector<16x4xi1>, vector<16x4xf32>
    %33 = vector.shape_cast %32 : vector<16x4xf32> to vector<16x4x1xf32>
    %34 = vector.broadcast %33 : vector<16x4x1xf32> to vector<16x4x32xf32>
    %35 = arith.mulf %34, %24 : vector<16x4x32xf32>
    %cst_6 = arith.constant dense<0xFF800000> : vector<16x32xf32>
    %36 = vector.multi_reduction <maximumf>, %35, %cst_6 [1] : vector<16x4x32xf32> to vector<16x32xf32>
    %cst_7 = arith.constant 0.000000e+00 : f32
    %37 = vector.broadcast %cst_7 : f32 to vector<16x1xf32>
    %38 = arith.select %14, %37, %12 : vector<16x1xi1>, vector<16x1xf32>
    %cst_8 = arith.constant 1.000000e+00 : f32
    %39 = vector.broadcast %cst_8 : f32 to vector<16x1xf32>
    %40 = arith.subf %39, %38 : vector<16x1xf32>
    %cst_9 = arith.constant 0.000000e+00 : f32
    %41 = vector.broadcast %cst_9 : f32 to vector<16x1xf32>
    %42 = arith.select %14, %41, %40 : vector<16x1xi1>, vector<16x1xf32>
    %43 = vector.broadcast %38 : vector<16x1xf32> to vector<16x32xf32>
    %44 = arith.mulf %43, %36 : vector<16x32xf32>
    %45 = vector.broadcast %42 : vector<16x1xf32> to vector<16x32xf32>
    %46 = arith.mulf %45, %10 : vector<16x32xf32>
    %47 = arith.addf %44, %46 : vector<16x32xf32>
    %48 = vector.shape_cast %47 : vector<16x32xf32> to vector<2x8x32xf32>
    %cst_10 = arith.constant dense<0.000000e+00> : vector<2x32xf32>
    %49 = vector.multi_reduction <add>, %48, %cst_10 [1] : vector<2x8x32xf32> to vector<2x32xf32>
    %c0_11 = arith.constant 0 : index
    %c0_12 = arith.constant 0 : index
    %50 = vector.load %arg2[%c0_11, %c0_12] : memref<33x2xf32, #tpu.memory_space<vmem>>, vector<32x2xf32>
    %c32 = arith.constant 32 : index
    %c0_13 = arith.constant 0 : index
    %51 = vector.load %arg2[%c32, %c0_13] : memref<33x2xf32, #tpu.memory_space<vmem>>, vector<1x2xf32>
    %cst_14 = arith.constant dense<0.000000e+00> : vector<2x2xf32>
    %52 = tpu.matmul %49, %50, %cst_14 {dimension_numbers = #tpu.dot_dimension_numbers<[1], [0], [0], [1], [0, 0, 1, 1], [], []>} : vector<2x32xf32>, vector<32x2xf32>, vector<2x2xf32> -> vector<2x2xf32>
    %53 = vector.broadcast %51 : vector<1x2xf32> to vector<2x2xf32>
    %54 = arith.addf %52, %53 : vector<2x2xf32>
    %c0_15 = arith.constant 0 : index
    %c0_16 = arith.constant 0 : index
    %55 = vector.load %arg3[%c0_15, %c0_16] : memref<2x2xf32, #tpu.memory_space<vmem>>, vector<2x2xf32>
    tpu.vector_store %arg3[%c0_15, %c0_16], %54 {strides = array<i32>} : memref<2x2xf32, #tpu.memory_space<vmem>>, vector<2x2xf32>,
    return
  }
}

</mosaic_0001>

<bundles_post_ra>
// kernel: tpu_custom_call.1
= control target key start
LH: loop header
LB: loop body
LE: loop exit
PB: predicated region body
PF: predicated region fallthrough
CT: control target
= control target key end

     0   :  { %v19_v1 = vlaneseq  ;;  %v1138_v2 = vmov 0   ;;  %s1462_s0 = inlined_call_operand.vmem [shape: s32[16,5], index: 0, kind: input, shape index: {}]   ;;  %s1463_s1 = inlined_call_operand.vmem [shape: f32[16,49], index: 1, kind: input, shape index: {}]   ;;  %s1464_s2 = inlined_call_operand.vmem [shape: f32[33,2], index: 2, kind: input, shape index: {}]   ;;  %s1465_s3 = inlined_call_operand.hbm [shape: f32[2,2], index: 3, kind: output, shape index: {}]  }
   0x1   :  { %v1167_v0 = vld [vmem:[%s1462_s0] sm:$0xff]  ;;  %1059 = vset.pattern.permute.xlu0 %v1138_v2 }
   0x2   :  { %8 = vsyncpa [#allocation3], 0  ;;  %22 = vperm.xlu0 %1059, %v1167_v0   ;;  %v67_v3 = vshrl.u32 %v19_v1, 7  ;;  %v1175_v5 = vld [vmem:[%s1462_s0 + $0x8] sm:$0xff]  ;;  %v65_v7 = vperm.slane %v1167_v0, 0  ;;  %v72_v9 = vperm.slane %v1167_v0, 1 }
   0x3   :  { %v121_v6 = vperm.slane %v1175_v5, 0  ;;  %v128_v8 = vperm.slane %v1175_v5, 1  ;;  %v79_v10 = vperm.slane %v1167_v0, 2  ;;  %v86_v11 = vperm.slane %v1167_v0, 3  ;;  %v18_v22 = vld [vmem:[%s1463_s1 + $0x8] sm:$0xff]  ;;  %v17_v23 = vld [vmem:[%s1463_s1] sm:$0xff] }
   0x4   :  { %v68_v4 = vadd.s32 1, %v67_v3  ;;  %v135_v12 = vperm.slane %v1175_v5, 2  ;;  %v149_v13 = vperm.slane %v1175_v5, 4  ;;  %v93_v14 = vperm.slane %v1167_v0, 4  ;;  %54 = vmatpush.msra.mxu0 %v18_v22  ;;  %302 = vmatpush.msra.mxu1 %v18_v22  ;;  %s1140_s1 = smov 32   ;;  %s1141_s19 = smov 80  }
   0x5   :  { %v142_v15 = vperm.slane %v1175_v5, 3  ;;  %v107_v16 = vperm.slane %v1167_v0, 6  ;;  %v156_v17 = vperm.slane %v1175_v5, 5  ;;  %v100_v18 = vperm.slane %v1167_v0, 5  ;;  %1050 = vmatpush.msra.mxu3 %v18_v22  ;;  %1049 = vmatpush.msra.mxu2 %v18_v22  ;;  %s1142_s20 = smov 96   ;;  %s1143_s4 = smov [#allocation2]  }
   0x6   :  { %1061 = vset.pattern.permute.xlu2 %v68_v4  ;;  %1060 = vset.pattern.permute.xlu1 %v68_v4  ;;  %v170_v19 = vperm.slane %v1175_v5, 7  ;;  %v114_v20 = vperm.slane %v1167_v0, 7  ;;  %v163_v21 = vperm.slane %v1175_v5, 6  ;;  %vm63_vm0 = vcmp.eq.s32.totalorder %v1167_v0, 0  ;;  %s1009_s5 = sshll.u32 %s1143_s4, 4  ;;  %s1011_s8 = sshll.u32 %s1465_s3, 4  ;;  %s1010_s5 = int_to_ptr.vmem [resolvable:$true] %s1009_s5  ;;  %s1012_s8 = int_to_ptr.hbm [resolvable:$true] %s1011_s8 }
   0x7   :  { %55 = vmatpush.msra.mxu0 %v17_v23  ;;  %303 = vmatpush.msra.mxu1 %v17_v23  ;;  %vm64_vm1 = vcmp.eq.s32.totalorder %v1175_v5, 0  ;;  %v578_v24 = vsel %vm63_vm0, 1, %v1138_v2  ;;  %v1211_v27 = vand.u32 127, %v19_v1  ;;  %v1139_v28 = vmov 0.0  }
   0x8   :  { %1052 = vmatpush.msra.mxu3 %v17_v23  ;;  %1051 = vmatpush.msra.mxu2 %v17_v23  ;;  %v579_v25 = vsel %vm64_vm1, 1, %v1138_v2  ;;  %vm33_vm4 = vcmask 130048  }
   0xa   :  { %25 = vperm.xlu0 %1059, %v1175_v5  }
   0xe   :  { %126 = vperm.xlu2 %1061, %v121_v6   ;;  %70 = vperm.xlu1 %1060, %v65_v7  }
  0x12   :  { %1062 = vset.pattern.permute.xlu0 %v68_v4 }
  0x16   :  { %133 = vperm.xlu2 %1061, %v128_v8   ;;  %77 = vperm.xlu1 %1060, %v72_v9  }
  0x1a   :  { %84 = vperm.xlu0 %1062, %v79_v10  }
  0x1e   :  { %91 = vperm.xlu2 %1061, %v86_v11   ;;  %140 = vperm.xlu1 %1060, %v135_v12  }
  0x22   :  { %154 = vperm.xlu0 %1062, %v149_v13  }
  0x26   :  { %98 = vperm.xlu2 %1061, %v93_v14   ;;  %147 = vperm.xlu1 %1060, %v142_v15  }
  0x2a   :  { %112 = vperm.xlu0 %1062, %v107_v16  }
  0x2e   :  { %161 = vperm.xlu2 %1061, %v156_v17   ;;  %105 = vperm.xlu1 %1060, %v100_v18  }
  0x32   :  { %175 = vperm.xlu0 %1062, %v170_v19  }
  0x36   :  { %119 = vperm.xlu2 %1061, %v114_v20   ;;  %168 = vperm.xlu1 %1060, %v163_v21  }
  0x3a   :  { %1105 = vset.pattern.permute.xlu0 %v67_v3 }
  0x3e   :  { %1063 = vset.pattern.permute.xlu1 %v1138_v2  ;;  %1064 = vset.pattern.permute.xlu2 %v1138_v2 }
  0x3f   :  { %581 = vperm.xlu1 %1063, %v578_v24   ;;  %584 = vperm.xlu2 %1064, %v579_v25  }
  0x47   :  { %1106 = vset.pattern.permute.xlu2 %v67_v3  ;;  %1107 = vset.pattern.permute.xlu1 %v67_v3 }
  0x68   :  { %v127_v26 = vpop.permute.xlu2 %126 }
  0x69   :  { %vm185_vm2 = vcmp.eq.s32.totalorder %v127_v26, %v1211_v27 }
  0x6a   :  { %v1032_v29 = vsel %vm185_vm2, 1.0, %v1139_v28 }
  0x70   :  { %v134_v30 = vpop.permute.xlu2 %133 }
  0x71   :  { %vm186_vm3 = vcmp.eq.s32.totalorder %v134_v30, %v1211_v27 }
  0x72   :  { %v1033_v31 = vsel %vm186_vm3, 1.0, %v1139_v28 }
  0x73   :  { %v1070_v32 = vpack.i.bf16 %v1033_v31, %v1032_v29 }
  0x74   :  { %v23_v33 = vpop.permute.xlu0 %22 }
  0x75   :  { %vm27_vm5 = vcmp.eq.s32.totalorder %v23_v33, %v1211_v27  ;;  %1071 = vrot.lane.b32.xlu2 %v1070_v32, %s1140_s1 }
  0x76   :  { %v1020_v34 = vsel %vm27_vm5, 1.0, %v1139_v28 }
  0x77   :  { %1022 = vmatmul.msk.f32.vlgmr.msra.gmra.mxu0 %vm33_vm4, %v1020_v34 }
  0x78   :  { %v92_v35 = vpop.permute.xlu2 %91 }
  0x79   :  { %vm180_vm6 = vcmp.eq.s32.totalorder %v92_v35, %v1211_v27 }
  0x7a   :  { %v1027_v36 = vsel %vm180_vm6, 1.0, %v1139_v28 }
  0x7b   :  { %247 = vst [vmem:[#allocation1 + $0x11] ss:$2 sm:$0xff] %v1027_v36 }
  0x7c   :  { %v26_v37 = vpop.permute.xlu0 %25 }
  0x7d   :  { %vm28_vm7 = vcmp.eq.s32.totalorder %v26_v37, %v1211_v27 }
  0x7e   :  { %v1021_v38 = vsel %vm28_vm7, 1.0, %v1139_v28 }
  0x7f   :  { %1023 = vmatmul.msk.f32.gmra.mxu0 %vm33_vm4, %v1021_v38 }
  0x80   :  { %v99_v39 = vpop.permute.xlu2 %98  ;;  %v71_v40 = vpop.permute.xlu1 %70 }
  0x81   :  { %vm181_vm8 = vcmp.eq.s32.totalorder %v99_v39, %v1211_v27  ;;  %vm177_vm9 = vcmp.eq.s32.totalorder %v71_v40, %v1211_v27 }
  0x82   :  { %v1028_v41 = vsel %vm181_vm8, 1.0, %v1139_v28  ;;  %v1024_v42 = vsel %vm177_vm9, 1.0, %v1139_v28  ;;  %vm620_vm8 = vcmask 1041409   ;;  %vm622_vm9 = vcmask 1042434  }
  0x83   :  { %249 = vst [vmem:[#allocation1 + $0x20] ss:$2 sm:$0xff] %v1028_v41 }
  0x84   :  { %241 = vst [vmem:[#allocation1] ss:$2 sm:$0xff] %v1024_v42 }
  0x88   :  { %v162_v43 = vpop.permute.xlu2 %161  ;;  %v78_v44 = vpop.permute.xlu1 %77 }
  0x89   :  { %vm178_vm10 = vcmp.eq.s32.totalorder %v78_v44, %v1211_v27  ;;  %vm190_vm3 = vcmp.eq.s32.totalorder %v162_v43, %v1211_v27 }
  0x8a   :  { %v1025_v45 = vsel %vm178_vm10, 1.0, %v1139_v28  ;;  %v1037_v3 = vsel %vm190_vm3, 1.0, %v1139_v28  ;;  %vm624_vm10 = vcmask 1043459   ;;  %vm1002_vm3 = vcmask 9216  }
  0x8b   :  { %v1065_v46 = vpack.i.bf16 %v1025_v45, %v1024_v42  ;;  %243 = vst [vmem:[#allocation1 + $0x1] ss:$2 sm:$0xff] %v1025_v45 }
  0x8c   :  { %v85_v47 = vpop.permute.xlu0 %84 }
  0x8d   :  { %vm179_vm11 = vcmp.eq.s32.totalorder %v85_v47, %v1211_v27  ;;  %1066 = vrot.lane.b32.xlu1 %v1065_v46, %s1140_s1 }
  0x8e   :  { %v1026_v48 = vsel %vm179_vm11, 1.0, %v1139_v28  ;;  %vm626_vm11 = vcmask 1044484  }
  0x8f   :  { %245 = vst [vmem:[#allocation1 + $0x10] ss:$2 sm:$0xff] %v1026_v48 }
  0x90   :  { %v120_v49 = vpop.permute.xlu2 %119  ;;  %v141_v50 = vpop.permute.xlu1 %140 }
  0x91   :  { %vm184_vm12 = vcmp.eq.s32.totalorder %v120_v49, %v1211_v27  ;;  %vm187_vm13 = vcmp.eq.s32.totalorder %v141_v50, %v1211_v27 }
  0x92   :  { %v1031_v51 = vsel %vm184_vm12, 1.0, %v1139_v28  ;;  %v1034_v52 = vsel %vm187_vm13, 1.0, %v1139_v28  ;;  %v256_v53 = vld.sshfl [vmem:[#allocation1] sm:$0xff pattern:$0x75316420]  ;;  %vm628_vm12 = vcmask 1045509  }
  0x93   :  { %255 = vst [vmem:[#allocation1 + $0x31] ss:$2 sm:$0xff] %v1031_v51  ;;  %v1075_v54 = vpack.i.bf16 %v1034_v52, %v1026_v48  ;;  %1040 = vmatmul.msk.f32.vlgmr.msra.gmra.mxu1 %vm33_vm4, %v256_v53  ;;  %vm630_vm13 = vcmask 1046534  }
  0x94   :  { %260 = vst [vmem:[#allocation1] ss:$2 sm:$0xff] %v1032_v29  ;;  %v155_v55 = vpop.permute.xlu0 %154 }
  0x95   :  { %261 = vst [vmem:[#allocation1 + $0x1] ss:$2 sm:$0xff] %v1033_v31  ;;  %vm189_vm14 = vcmp.eq.s32.totalorder %v155_v55, %v1211_v27  ;;  %1076 = vrot.lane.b32.xlu0 %v1075_v54, %s1140_s1 }
  0x96   :  { %v1036_v56 = vsel %vm189_vm14, 1.0, %v1139_v28  ;;  %v257_v57 = vld.sshfl [vmem:[#allocation1 + $0x10] sm:$0xff pattern:$0x75316420]  ;;  %vm632_vm14 = vcmask 1047559  }
  0x97   :  { %v1085_v58 = vpack.i.bf16 %v1036_v56, %v1028_v41  ;;  %262 = vst [vmem:[#allocation1 + $0x10] ss:$2 sm:$0xff] %v1034_v52 }
  0x98   :  { %v148_v59 = vpop.permute.xlu1 %147 }
  0x99   :  { %vm188_vm15 = vcmp.eq.s32.totalorder %v148_v59, %v1211_v27  ;;  %1086 = vrot.lane.b32.xlu2 %v1085_v58, %s1140_s1  ;;  %v1267_v19 = vpop.permute.xlu2 %584 }
  0x9a   :  { %v1035_v60 = vsel %vm188_vm15, 1.0, %v1139_v28 }
  0x9b   :  { %v1080_v61 = vpack.i.bf16 %v1035_v60, %v1027_v36  ;;  %263 = vst [vmem:[#allocation1 + $0x11] ss:$2 sm:$0xff] %v1035_v60  ;;  %1041 = vmatmul.msk.f32.gmra.mxu1 %vm33_vm4, %v257_v57 }
  0x9c   :  { %v113_v62 = vpop.permute.xlu0 %112  ;;  %v268_v16 = vld.sshfl [vmem:[#allocation1] sm:$0xff pattern:$0x75316420] }
  0x9d   :  { %vm183_vm2 = vcmp.eq.s32.totalorder %v113_v62, %v1211_v27  ;;  %1081 = vrot.lane.b32.xlu1 %v1080_v61, %s1140_s1 }
  0x9e   :  { %v1030_v63 = vsel %vm183_vm2, 1.0, %v1139_v28  ;;  %vm587_vm2 = vcmp.eq.s32.totalorder %v1267_v19, 1 }
  0x9f   :  { %253 = vst [vmem:[#allocation1 + $0x30] ss:$2 sm:$0xff] %v1030_v63 }
  0xa0   :  { %v106_v1 = vpop.permute.xlu1 %105 }
  0xa1   :  { %vm182_vm5 = vcmp.eq.s32.totalorder %v106_v1, %v1211_v27 }
  0xa2   :  { %v1029_v4 = vsel %vm182_vm5, 1.0, %v1139_v28  ;;  %v269_v6 = vld.sshfl [vmem:[#allocation1 + $0x10] sm:$0xff pattern:$0x75316420] }
  0xa3   :  { %v1090_v7 = vpack.i.bf16 %v1037_v3, %v1029_v4  ;;  %251 = vst [vmem:[#allocation1 + $0x21] ss:$2 sm:$0xff] %v1029_v4  ;;  %1045 = vmatmul.msk.f32.vlgmr.msra.gmra.mxu3 %vm33_vm4, %v269_v6 }
  0xa4   :  { %v176_v8 = vpop.permute.xlu0 %175 }
  0xa5   :  { %vm192_vm6 = vcmp.eq.s32.totalorder %v176_v8, %v1211_v27  ;;  %1091 = vrot.lane.b32.xlu0 %v1090_v7, %s1140_s1 }
  0xa6   :  { %v1039_v9 = vsel %vm192_vm6, 1.0, %v1139_v28  ;;  %v259_v10 = vld.sshfl [vmem:[#allocation1 + $0x30] sm:$0xff pattern:$0x75316420] }
  0xa7   :  { %v1100_v11 = vpack.i.bf16 %v1039_v9, %v1031_v51  ;;  %267 = vst [vmem:[#allocation1 + $0x31] ss:$2 sm:$0xff] %v1039_v9  ;;  %1043 = vmatmul.msk.f32.vlgmr.msra.gmra.mxu2 %vm33_vm4, %v259_v10 }
  0xa8   :  { %v169_v12 = vpop.permute.xlu1 %168 }
  0xa9   :  { %vm191_vm7 = vcmp.eq.s32.totalorder %v169_v12, %v1211_v27  ;;  %1101 = vrot.lane.b32.xlu2 %v1100_v11, %s1140_s1 }
  0xaa   :  { %v1038_v13 = vsel %vm191_vm7, 1.0, %v1139_v28  ;;  %v258_v14 = vld.sshfl [vmem:[#allocation1 + $0x20] sm:$0xff pattern:$0x75316420] }
  0xab   :  { %v1095_v15 = vpack.i.bf16 %v1038_v13, %v1030_v63  ;;  %266 = vst [vmem:[#allocation1 + $0x30] ss:$2 sm:$0xff] %v1038_v13  ;;  %1042 = vmatmul.msk.f32.gmra.mxu1 %vm33_vm4, %v258_v14 }
  0xac   :  { %264 = vst [vmem:[#allocation1 + $0x20] ss:$2 sm:$0xff] %v1036_v56 }
  0xad   :  { %265 = vst [vmem:[#allocation1 + $0x21] ss:$2 sm:$0xff] %v1037_v3  ;;  %1096 = vrot.lane.b32.xlu1 %v1095_v15, %s1140_s1 }
  0xaf   :  { %1044 = vmatmul.msk.f32.gmra.mxu2 %vm33_vm4, %v268_v16 }
  0xb1   :  { %v1275_v23 = vpop.permute.xlu1 %581 }
  0xb2   :  { %v271_v18 = vld.sshfl [vmem:[#allocation1 + $0x30] sm:$0xff pattern:$0x75316420]  ;;  %vm586_vm15 = vcmp.eq.s32.totalorder %v1275_v23, 1 }
  0xb4   :  { %v270_v17 = vld.sshfl [vmem:[#allocation1 + $0x20] sm:$0xff pattern:$0x75316420] }
  0xb5   :  { %1046 = vmatmul.msk.f32.gmra.mxu3 %vm33_vm4, %v270_v17 }
  0xbd   :  { %1047 = vmatmul.msk.f32.gmra.mxu3 %vm33_vm4, %v271_v18  ;;  %vm529_vm4 = vcmask 125952  }
  0xcf   :  { %v1269_v20 = vpop.permute.xlu2 %1071 }
  0xd0   :  { %v1073_v49 = vunpack.i.l.bf16 %v1269_v20  ;;  %v1074_v17 = vunpack.i.h.bf16 %v1269_v20 }
  0xf3   :  { %v1271_v21 = vpop.permute.xlu2 %1086 }
  0xf4   :  { %v1273_v22 = vpop.f32.mrf.mxu0  ;;  %v1088_v25 = vunpack.i.l.bf16 %v1271_v21 }
  0xf5   :  { %v358_v24 = vrot.slane %v1273_v22, 4  ;;  %886 = vrot.lane.b32.xlu0 %v1273_v22, %s1141_s19  ;;  %v355_v29 = vrot.slane %v1273_v22, 1  ;;  %v369_v30 = vperm.slane %v1273_v22, 0  ;;  %v361_v32 = vrot.slane %v1273_v22, 7 }
  0xf6   :  { %v356_v41 = vrot.slane %v1273_v22, 2  ;;  %v357_v50 = vrot.slane %v1273_v22, 3  ;;  %v359_v59 = vrot.slane %v1273_v22, 5  ;;  %v360_v7 = vrot.slane %v1273_v22, 6 }
  0xf7   :  { %v373_v26 = vperm.slane %v358_v24, 0  ;;  %v370_v31 = vperm.slane %v355_v29, 0  ;;  %v376_v38 = vperm.slane %v361_v32, 0 }
  0xf8   :  { %v371_v45 = vperm.slane %v356_v41, 0  ;;  %v372_v54 = vperm.slane %v357_v50, 0  ;;  %v374_v63 = vperm.slane %v359_v59, 0  ;;  %v375_v10 = vperm.slane %v360_v7, 0 }
  0xf9   :  { %v453_v28 = vmul.f32 %v1088_v25, %v373_v26 }
  0xfb   :  { %489 = vrot.lane.b32.xlu2 %v453_v28, %s1142_s20 }
  0xfc   :  { %v1291_v43 = vpop.f32.mrf.mxu0 }
  0xfd   :  { %v377_v48 = vperm.slane %v1291_v43, 0  ;;  %v363_v53 = vrot.slane %v1291_v43, 2  ;;  %v366_v62 = vrot.slane %v1291_v43, 5  ;;  %v362_v13 = vrot.slane %v1291_v43, 1 }
  0xfe   :  { %v364_v14 = vrot.slane %v1291_v43, 3  ;;  %v365_v26 = vrot.slane %v1291_v43, 4  ;;  %v367_v28 = vrot.slane %v1291_v43, 6 }
  0xff   :  { %v1067_v33 = vpop.permute.xlu1 %1066  ;;  %v457_v51 = vmul.f32 %v1073_v49, %v377_v48  ;;  %v379_v58 = vperm.slane %v363_v53, 0  ;;  %v382_v6 = vperm.slane %v366_v62, 0  ;;  %v378_v16 = vperm.slane %v362_v13, 0 }
 0x100   :  { %v1069_v34 = vunpack.i.h.bf16 %v1067_v33  ;;  %v1068_v35 = vunpack.i.l.bf16 %v1067_v33  ;;  %v380_v18 = vperm.slane %v364_v14, 0  ;;  %v383_v32 = vperm.slane %v367_v28, 0 }
 0x101   :  { %v458_v25 = vmul.f32 %v1074_v17, %v378_v16  ;;  %v368_v33 = vrot.slane %v1291_v43, 7 }
 0x102   :  { %v450_v36 = vmul.f32 %v1069_v34, %v370_v31  ;;  %v449_v37 = vmul.f32 %v1068_v35, %v369_v30  ;;  %v381_v30 = vperm.slane %v365_v26, 0  ;;  %v1089_v31 = vunpack.i.h.bf16 %v1271_v21 }
 0x103   :  { %v1285_v39 = vpop.permute.xlu2 %1101  ;;  %v384_v35 = vperm.slane %v368_v33, 0 }
 0x104   :  { %v1103_v40 = vunpack.i.l.bf16 %v1285_v39  ;;  %483 = vrot.lane.b32.xlu1 %v450_v36, %s1142_s20  ;;  %481 = vrot.lane.b32.xlu0 %v449_v37, %s1142_s20  ;;  %v461_v20 = vmul.f32 %v1089_v31, %v381_v30  ;;  %v1104_v36 = vunpack.i.h.bf16 %v1285_v39 }
 0x106   :  { %v456_v42 = vmul.f32 %v1103_v40, %v376_v38  ;;  %v464_v37 = vmul.f32 %v1104_v36, %v384_v35 }
 0x107   :  { %v1077_v44 = vpop.permute.xlu0 %1076 }
 0x108   :  { %v1078_v46 = vunpack.i.l.bf16 %v1077_v44  ;;  %495 = vrot.lane.b32.xlu2 %v456_v42, %s1142_s20  ;;  %v1079_v56 = vunpack.i.h.bf16 %v1077_v44 }
 0x10a   :  { %v451_v47 = vmul.f32 %v1078_v46, %v371_v45  ;;  %v459_v60 = vmul.f32 %v1079_v56, %v379_v58 }
 0x10c   :  { %485 = vrot.lane.b32.xlu1 %v451_v47, %s1142_s20 }
 0x10f   :  { %v1082_v52 = vpop.permute.xlu1 %1081 }
 0x110   :  { %v1083_v55 = vunpack.i.l.bf16 %v1082_v52  ;;  %497 = vrot.lane.b32.xlu2 %v457_v51, %s1142_s20  ;;  %v1084_v15 = vunpack.i.h.bf16 %v1082_v52 }
 0x112   :  { %v452_v57 = vmul.f32 %v1083_v55, %v372_v54  ;;  %v460_v24 = vmul.f32 %v1084_v15, %v380_v18 }
 0x114   :  { %487 = vrot.lane.b32.xlu0 %v452_v57, %s1142_s20 }
 0x117   :  { %v1092_v61 = vpop.permute.xlu0 %1091 }
 0x118   :  { %v1093_v1 = vunpack.i.l.bf16 %v1092_v61  ;;  %501 = vrot.lane.b32.xlu2 %v459_v60, %s1142_s20  ;;  %v1094_v3 = vunpack.i.h.bf16 %v1092_v61 }
 0x11a   :  { %v454_v4 = vmul.f32 %v1093_v1, %v374_v63  ;;  %v462_v8 = vmul.f32 %v1094_v3, %v382_v6 }
 0x11c   :  { %491 = vrot.lane.b32.xlu1 %v454_v4, %s1142_s20 }
 0x11f   :  { %v1097_v9 = vpop.permute.xlu1 %1096 }
 0x120   :  { %v1098_v11 = vunpack.i.l.bf16 %v1097_v9  ;;  %507 = vrot.lane.b32.xlu2 %v462_v8, %s1142_s20  ;;  %v1099_v29 = vunpack.i.h.bf16 %v1097_v9 }
 0x122   :  { %v455_v12 = vmul.f32 %v1098_v11, %v375_v10  ;;  %v463_v34 = vmul.f32 %v1099_v29, %v383_v32 }
 0x124   :  { %888 = vrot.lane.b32.xlu1 %v1291_v43, %s1141_s19  ;;  %493 = vrot.lane.b32.xlu0 %v455_v12, %s1142_s20 }
 0x12c   :  { %503 = vrot.lane.b32.xlu1 %v460_v24, %s1142_s20  ;;  %499 = vrot.lane.b32.xlu0 %v458_v25, %s1142_s20 }
 0x134   :  { %509 = vrot.lane.b32.xlu1 %v463_v34, %s1142_s20  ;;  %505 = vrot.lane.b32.xlu0 %v461_v20, %s1142_s20 }
 0x13c   :  { %511 = vrot.lane.b32.xlu0 %v464_v37, %s1142_s20 }
 0x155   :  { %v490_v44 = vpop.permute.xlu2 %489 }
 0x156   :  { %v542_v46 = vsel %vm529_vm4, %v490_v44, 0.0 }
 0x162   :  { %v496_v47 = vpop.permute.xlu2 %495 }
 0x163   :  { %v551_v49 = vsel %vm529_vm4, %v496_v47, 0.0 }
 0x167   :  { %v1323_v38 = vpop.permute.xlu0 %886 }
 0x168   :  { %v892_v19 = vsel %vm63_vm0, 0.0, %v1323_v38 }
 0x16a   :  { %v498_v56 = vpop.permute.xlu2 %497 }
 0x16b   :  { %v554_v60 = vsel %vm529_vm4, %v498_v56, 0.0 }
 0x172   :  { %v502_v62 = vpop.permute.xlu2 %501 }
 0x173   :  { %v560_v6 = vsel %vm529_vm4, %v502_v62, 0.0 }
 0x176   :  { %v484_v40 = vpop.permute.xlu1 %483  ;;  %v482_v41 = vpop.permute.xlu0 %481 }
 0x177   :  { %v533_v21 = vsel %vm529_vm4, %v484_v40, 0.0  ;;  %v530_v42 = vsel %vm529_vm4, %v482_v41, 0.0 }
 0x178   :  { %534 = vadd.xlane.f32.xlu2 %v533_v21  ;;  %531 = vadd.xlane.f32.xlu1 %v530_v42 }
 0x17a   :  { %v508_v7 = vpop.permute.xlu2 %507 }
 0x17b   :  { %v569_v10 = vsel %vm529_vm4, %v508_v7, 0.0 }
 0x17e   :  { %v486_v45 = vpop.permute.xlu1 %485 }
 0x17f   :  { %v536_v39 = vsel %vm529_vm4, %v486_v45, 0.0 }
 0x180   :  { %543 = vadd.xlane.f32.xlu2 %v542_v46  ;;  %537 = vadd.xlane.f32.xlu1 %v536_v39 }
 0x186   :  { %v488_v48 = vpop.permute.xlu0 %487 }
 0x187   :  { %v539_v50 = vsel %vm529_vm4, %v488_v48, 0.0 }
 0x188   :  { %552 = vadd.xlane.f32.xlu2 %v551_v49  ;;  %540 = vadd.xlane.f32.xlu0 %v539_v50 }
 0x18e   :  { %v492_v51 = vpop.permute.xlu1 %491 }
 0x18f   :  { %v545_v52 = vsel %vm529_vm4, %v492_v51, 0.0 }
 0x190   :  { %546 = vadd.xlane.f32.xlu1 %v545_v52 }
 0x196   :  { %v1332_v53 = vpop.permute.xlu1 %888  ;;  %v494_v54 = vpop.permute.xlu0 %493 }
 0x197   :  { %v548_v55 = vsel %vm529_vm4, %v494_v54, 0.0 }
 0x198   :  { %549 = vadd.xlane.f32.xlu0 %v548_v55 }
 0x19e   :  { %v504_v57 = vpop.permute.xlu1 %503  ;;  %v500_v58 = vpop.permute.xlu0 %499 }
 0x19f   :  { %v563_v59 = vsel %vm529_vm4, %v504_v57, 0.0  ;;  %v557_v61 = vsel %vm529_vm4, %v500_v58, 0.0 }
 0x1a0   :  { %564 = vadd.xlane.f32.xlu1 %v563_v59  ;;  %555 = vadd.xlane.f32.xlu0 %v554_v60 }
 0x1a1   :  { %558 = vadd.xlane.f32.xlu2 %v557_v61 }
 0x1a6   :  { %v510_v63 = vpop.permute.xlu1 %509  ;;  %v506_v1 = vpop.permute.xlu0 %505 }
 0x1a7   :  { %v572_v3 = vsel %vm529_vm4, %v510_v63, 0.0  ;;  %v566_v4 = vsel %vm529_vm4, %v506_v1, 0.0 }
 0x1a8   :  { %573 = vadd.xlane.f32.xlu1 %v572_v3  ;;  %567 = vadd.xlane.f32.xlu0 %v566_v4 }
 0x1a9   :  { %561 = vadd.xlane.f32.xlu2 %v560_v6 }
 0x1ae   :  { %v512_v8 = vpop.permute.xlu0 %511 }
 0x1af   :  { %v575_v9 = vsel %vm529_vm4, %v512_v8, 0.0 }
 0x1b0   :  { %576 = vadd.xlane.f32.xlu0 %v575_v9 }
 0x1b1   :  { %570 = vadd.xlane.f32.xlu2 %v569_v10 }
 0x1eb   :  { %v532_v11 = vpop.xlane.xlu1 %531  ;;  %v535_v12 = vpop.xlane.xlu2 %534 }
 0x1ec   :  { %v605_v16 = vperm.slane %v535_v12, %v1211_v27  ;;  %v604_v17 = vperm.slane %v532_v11, %v1211_v27 }
 0x1ee   :  { %v621_v26 = vsel %vm620_vm8, %v605_v16, %v604_v17 }
 0x1f3   :  { %v538_v13 = vpop.xlane.xlu1 %537  ;;  %v544_v14 = vpop.xlane.xlu2 %543 }
 0x1f4   :  { %v606_v18 = vperm.slane %v538_v13, %v1211_v27  ;;  %v608_v31 = vperm.slane %v544_v14, %v1211_v27 }
 0x1f6   :  { %v623_v28 = vsel %vm622_vm9, %v606_v18, %v621_v26 }
 0x1fb   :  { %v541_v15 = vpop.xlane.xlu0 %540  ;;  %v553_v32 = vpop.xlane.xlu2 %552 }
 0x1fc   :  { %v607_v24 = vperm.slane %v541_v15, %v1211_v27  ;;  %v611_v35 = vperm.slane %v553_v32, %v1211_v27  ;;  %v1388_v32 = vpop.f32.mrf.mxu2 }
 0x1fe   :  { %v625_v29 = vsel %vm624_vm10, %v607_v24, %v623_v28  ;;  %v894_v24 = vsub.f32 1.0, %v892_v19 }
 0x1ff   :  { %v627_v34 = vsel %vm626_vm11, %v608_v31, %v625_v29  ;;  %v305_v31 = vpop.f32.mrf.mxu1 }
 0x200   :  { %v896_v26 = vsel %vm63_vm0, 0.0, %v894_v24  ;;  %vm773_vm0 = vcmask 257024  }
 0x203   :  { %v547_v25 = vpop.xlane.xlu1 %546 }
 0x204   :  { %v609_v30 = vperm.slane %v547_v25, %v1211_v27  ;;  %v893_v25 = vsel %vm64_vm1, 0.0, %v1332_v53  ;;  %v317_v5 = vpop.f32.mrf.mxu2 }
 0x205   :  { %v895_v28 = vsub.f32 1.0, %v893_v25 }
 0x206   :  { %v629_v36 = vsel %vm628_vm12, %v609_v30, %v627_v34  ;;  %v1390_v34 = vpop.f32.mrf.mxu3 }
 0x207   :  { %v897_v38 = vsel %vm64_vm1, 0.0, %v895_v28  ;;  %vm956_vm1 = vcmask 261120  }
 0x20b   :  { %v550_v33 = vpop.xlane.xlu0 %549 }
 0x20c   :  { %v610_v20 = vperm.slane %v550_v33, %v1211_v27  ;;  %v337_v33 = vrot.slane %v305_v31, 4 }
 0x20e   :  { %v631_v37 = vsel %vm630_vm13, %v610_v20, %v629_v36 }
 0x20f   :  { %v633_v40 = vsel %vm632_vm14, %v611_v35, %v631_v37  ;;  %v308_v35 = vpop.f32.mrf.mxu1 }
 0x210   :  { %v643_v41 = vsel %vm586_vm15, 0.0, %v633_v40  ;;  %v338_v40 = vrot.slane %v308_v35, 4 }
 0x211   :  { %v659_v21 = vperm.slane %v643_v41, 2  ;;  %v652_v42 = vperm.slane %v643_v41, 1  ;;  %v645_v44 = vperm.slane %v643_v41, 0  ;;  %v680_v47 = vperm.slane %v643_v41, 5 }
 0x212   :  { %v666_v48 = vperm.slane %v643_v41, 3  ;;  %v673_v49 = vperm.slane %v643_v41, 4  ;;  %v687_v58 = vperm.slane %v643_v41, 6 }
 0x213   :  { %664 = vperm.xlu1 %1107, %v659_v21   ;;  %657 = vperm.xlu2 %1106, %v652_v42   ;;  %v556_v45 = vpop.xlane.xlu0 %555  ;;  %v565_v39 = vpop.xlane.xlu1 %564 }
 0x214   :  { %v559_v46 = vpop.xlane.xlu2 %558  ;;  %650 = vperm.xlu0 %1105, %v645_v44   ;;  %v612_v51 = vperm.slane %v556_v45, %v1211_v27  ;;  %v615_v57 = vperm.slane %v565_v39, %v1211_v27  ;;  %v1393_v42 = vpop.f32.mrf.mxu3 }
 0x215   :  { %v613_v50 = vperm.slane %v559_v46, %v1211_v27  ;;  %v341_v46 = vrot.slane %v317_v5, 4 }
 0x217   :  { %v634_v55 = vsel %vm620_vm8, %v613_v50, %v612_v51 }
 0x21b   :  { %685 = vperm.xlu1 %1107, %v680_v47   ;;  %671 = vperm.xlu2 %1106, %v666_v48   ;;  %v568_v23 = vpop.xlane.xlu0 %567  ;;  %v574_v59 = vpop.xlane.xlu1 %573 }
 0x21c   :  { %v562_v52 = vpop.xlane.xlu2 %561  ;;  %678 = vperm.xlu0 %1105, %v673_v49   ;;  %v616_v61 = vperm.slane %v568_v23, %v1211_v27  ;;  %v618_v3 = vperm.slane %v574_v59, %v1211_v27  ;;  %v311_v48 = vpop.f32.mrf.mxu1 }
 0x21d   :  { %v614_v54 = vperm.slane %v562_v52, %v1211_v27 }
 0x21f   :  { %v635_v56 = vsel %vm622_vm9, %v614_v54, %v634_v55 }
 0x220   :  { %v636_v60 = vsel %vm624_vm10, %v615_v57, %v635_v56  ;;  %v339_v57 = vrot.slane %v311_v48, 4 }
 0x221   :  { %v637_v4 = vsel %vm626_vm11, %v616_v61, %v636_v60 }
 0x223   :  { %692 = vperm.xlu2 %1106, %v687_v58   ;;  %v577_v63 = vpop.xlane.xlu0 %576 }
 0x224   :  { %v571_v62 = vpop.xlane.xlu2 %570  ;;  %v619_v7 = vperm.slane %v577_v63, %v1211_v27 }
 0x225   :  { %v617_v1 = vperm.slane %v571_v62, %v1211_v27  ;;  %v694_v27 = vperm.slane %v643_v41, 7 }
 0x227   :  { %v638_v6 = vsel %vm628_vm12, %v617_v1, %v637_v4  ;;  %v1401_v4 = vpop.f32.mrf.mxu3 }
 0x228   :  { %v639_v8 = vsel %vm630_vm13, %v618_v3, %v638_v6 }
 0x229   :  { %v640_v9 = vsel %vm632_vm14, %v619_v7, %v639_v8 }
 0x22a   :  { %v644_v10 = vsel %vm587_vm2, 0.0, %v640_v9 }
 0x22b   :  { %v715_v11 = vperm.slane %v644_v10, 2  ;;  %v708_v12 = vperm.slane %v644_v10, 1  ;;  %v701_v13 = vperm.slane %v644_v10, 0  ;;  %v736_v14 = vperm.slane %v644_v10, 5 }
 0x22c   :  { %v729_v15 = vperm.slane %v644_v10, 4  ;;  %v722_v16 = vperm.slane %v644_v10, 3  ;;  %v750_v17 = vperm.slane %v644_v10, 7  ;;  %v743_v18 = vperm.slane %v644_v10, 6 }
 0x22d   :  { %720 = vperm.xlu0 %1105, %v715_v11   ;;  %713 = vperm.xlu2 %1106, %v708_v12  }
 0x22e   :  { %706 = vperm.xlu1 %1107, %v701_v13  }
 0x235   :  { %741 = vperm.xlu0 %1105, %v736_v14   ;;  %734 = vperm.xlu2 %1106, %v729_v15   ;;  %v344_v15 = vrot.slane %v1401_v4, 4 }
 0x236   :  { %727 = vperm.xlu1 %1107, %v722_v16  }
 0x23d   :  { %699 = vperm.xlu0 %1105, %v694_v27   ;;  %755 = vperm.xlu2 %1106, %v750_v17  }
 0x23e   :  { %748 = vperm.xlu1 %1107, %v743_v18  }
 0x245   :  { %1109 = vset.pattern.permute.xlu0 %v1138_v2  ;;  %1110 = vset.pattern.permute.xlu2 %v1138_v2 }
 0x246   :  { %1108 = vset.pattern.permute.xlu1 %v1138_v2  ;;  %905 = vperm.xlu0 %1109, %v893_v25  }
 0x247   :  { %944 = vperm.xlu2 %1110, %v896_v26   ;;  %900 = vperm.xlu1 %1108, %v892_v19  }
 0x24f   :  { %949 = vperm.xlu1 %1108, %v897_v38  }
 0x26d   :  { %v658_v29 = vpop.permute.xlu2 %657 }
 0x26e   :  { %v758_v20 = vmul.f32 %v658_v29, %v337_v33 }
 0x270   :  { %v781_v41 = vsel %vm773_vm0, %v758_v20, -inf  ;;  %v342_v20 = vrot.slane %v1390_v34, 4 }
 0x271   :  { %v782_v39 = vrot.slane %v781_v41, 4 }
 0x273   :  { %v783_v54 = vmax.f32 %v781_v41, %v782_v39  ;;  %v972_v39 = vld [vmem:[%s1464_s2 + $0x8] sm:$0xff] }
 0x275   :  { %v672_v30 = vpop.permute.xlu2 %671  ;;  %v784_v1 = vrot.slane %v783_v54, 2 }
 0x276   :  { %v760_v44 = vmul.f32 %v672_v30, %v338_v40 }
 0x277   :  { %v785_v16 = vmax.f32 %v783_v54, %v784_v1 }
 0x278   :  { %v795_v23 = vsel %vm773_vm0, %v760_v44, -inf  ;;  %v343_v44 = vrot.slane %v1393_v42, 4 }
 0x279   :  { %v796_v59 = vrot.slane %v795_v23, 4 }
 0x27b   :  { %v797_v8 = vmax.f32 %v795_v23, %v796_v59 }
 0x27d   :  { %v693_v53 = vpop.permute.xlu2 %692  ;;  %v798_v28 = vrot.slane %v797_v8, 2 }
 0x27e   :  { %v763_v60 = vmul.f32 %v693_v53, %v1388_v32 }
 0x280   :  { %v816_v9 = vsel %vm773_vm0, %v763_v60, -inf }
 0x281   :  { %v817_v18 = vrot.slane %v816_v9, 4 }
 0x283   :  { %v818_v40 = vmax.f32 %v816_v9, %v817_v18  ;;  %v340_v9 = vrot.slane %v1388_v32, 4 }
 0x285   :  { %v665_v36 = vpop.permute.xlu1 %664 }
 0x286   :  { %v651_v2 = vpop.permute.xlu0 %650  ;;  %v759_v21 = vmul.f32 %v665_v36, %v308_v35  ;;  %v974_v36 = vld [vmem:[%s1464_s2 + $0x18] sm:$0xff] }
 0x287   :  { %v714_v0 = vpop.permute.xlu2 %713  ;;  %v757_v37 = vmul.f32 %v651_v2, %v305_v31  ;;  %994 = vmatpush.msrb.mxu2 %v974_v36 }
 0x288   :  { %v788_v49 = vsel %vm773_vm0, %v759_v21, -inf  ;;  %v766_v51 = vmul.f32 %v714_v0, %v341_v46 }
 0x289   :  { %v774_v45 = vsel %vm773_vm0, %v757_v37, -inf  ;;  %v789_v58 = vrot.slane %v788_v49, 4  ;;  %v973_v37 = vld [vmem:[%s1464_s2 + $0x10] sm:$0xff] }
 0x28a   :  { %v775_v50 = vrot.slane %v774_v45, 4  ;;  %v837_v62 = vsel %vm773_vm0, %v766_v51, -inf  ;;  %995 = vmatpush.msrb.mxu2 %v973_v37 }
 0x28b   :  { %v790_v6 = vmax.f32 %v788_v49, %v789_v58  ;;  %v838_v7 = vrot.slane %v837_v62, 4 }
 0x28c   :  { %v776_v61 = vmax.f32 %v774_v45, %v775_v50  ;;  %996 = vmatpush.msrb.mxu2 %v972_v39 }
 0x28d   :  { %v686_v55 = vpop.permute.xlu1 %685  ;;  %v791_v19 = vrot.slane %v790_v6, 2  ;;  %v839_v24 = vmax.f32 %v837_v62, %v838_v7 }
 0x28e   :  { %v679_v47 = vpop.permute.xlu0 %678  ;;  %v762_v63 = vmul.f32 %v686_v55, %v339_v57  ;;  %v777_v10 = vrot.slane %v776_v61, 2  ;;  %v819_v57 = vrot.slane %v818_v40, 2 }
 0x28f   :  { %v735_v52 = vpop.permute.xlu2 %734  ;;  %v761_v56 = vmul.f32 %v679_v47, %v311_v48  ;;  %v840_v41 = vrot.slane %v839_v24, 2  ;;  %v786_v47 = vrot.slane %v785_v16, 1  ;;  %v1422_v48 = vmax.f32 %v797_v8, %v798_v28 }
 0x290   :  { %v809_v11 = vsel %vm773_vm0, %v762_v63, -inf  ;;  %v769_v13 = vmul.f32 %v735_v52, %v1393_v42  ;;  %v778_v38 = vmax.f32 %v776_v61, %v777_v10 }
 0x291   :  { %v802_v3 = vsel %vm773_vm0, %v761_v56, -inf  ;;  %v810_v29 = vrot.slane %v809_v11, 4  ;;  %v971_v56 = vld [vmem:[%s1464_s2] sm:$0xff]  ;;  %v841_v59 = vmax.f32 %v839_v24, %v840_v41 }
 0x292   :  { %v803_v12 = vrot.slane %v802_v3, 4  ;;  %v858_v31 = vsel %vm773_vm0, %v769_v13, -inf  ;;  %v779_v45 = vrot.slane %v778_v38, 1  ;;  %997 = vmatpush.msrb.mxu2 %v971_v56  ;;  %v787_v13 = vmax.f32 %v785_v16, %v786_v47 }
 0x293   :  { %v859_v46 = vrot.slane %v858_v31, 4  ;;  %v811_v49 = vmax.f32 %v809_v11, %v810_v29 }
 0x294   :  { %v804_v53 = vmax.f32 %v802_v3, %v803_v12  ;;  %v780_v61 = vmax.f32 %v778_v38, %v779_v45 }
 0x295   :  { %v860_v62 = vmax.f32 %v858_v31, %v859_v46  ;;  %v812_v3 = vrot.slane %v811_v49, 2 }
 0x296   :  { %v805_v50 = vrot.slane %v804_v53, 2 }
 0x297   :  { %v756_v25 = vpop.permute.xlu2 %755  ;;  %v813_v28 = vmax.f32 %v811_v49, %v812_v3 }
 0x298   :  { %v772_v0 = vmul.f32 %v756_v25, %v344_v15  ;;  %v806_v10 = vmax.f32 %v804_v53, %v805_v50  ;;  %v820_v25 = vmax.f32 %v818_v40, %v819_v57 }
 0x29a   :  { %v879_v23 = vsel %vm773_vm0, %v772_v0, -inf  ;;  %v821_v57 = vrot.slane %v820_v25, 1 }
 0x29f   :  { %v721_v14 = vpop.permute.xlu0 %720 }
 0x2a0   :  { %v707_v27 = vpop.permute.xlu1 %706  ;;  %v767_v17 = vmul.f32 %v721_v14, %v1390_v34  ;;  %v842_v14 = vrot.slane %v841_v59, 1 }
 0x2a1   :  { %v765_v26 = vmul.f32 %v707_v27, %v317_v5  ;;  %v792_v5 = vmax.f32 %v790_v6, %v791_v19  ;;  %v880_v6 = vrot.slane %v879_v23, 4  ;;  %v861_v19 = vrot.slane %v860_v62, 2 }
 0x2a2   :  { %v844_v30 = vsel %vm773_vm0, %v767_v17, -inf  ;;  %v800_v17 = vrot.slane %v1422_v48, 1  ;;  %v843_v16 = vmax.f32 %v841_v59, %v842_v14 }
 0x2a3   :  { %v830_v33 = vsel %vm773_vm0, %v765_v26, -inf  ;;  %v845_v2 = vrot.slane %v844_v30, 4  ;;  %v793_v58 = vrot.slane %v792_v5, 1  ;;  %v924_v26 = vsel %vm620_vm8, %v787_v13, %v780_v61 }
 0x2a4   :  { %v831_v35 = vrot.slane %v830_v33, 4  ;;  %v881_v38 = vmax.f32 %v879_v23, %v880_v6  ;;  %v801_v47 = vmax.f32 %v1422_v48, %v800_v17 }
 0x2a5   :  { %v846_v21 = vmax.f32 %v844_v30, %v845_v2  ;;  %v794_v18 = vmax.f32 %v792_v5, %v793_v58  ;;  %v807_v30 = vrot.slane %v806_v10, 1  ;;  %v814_v5 = vrot.slane %v813_v28, 1 }
 0x2a6   :  { %v832_v34 = vmax.f32 %v830_v33, %v831_v35  ;;  %v862_v35 = vmax.f32 %v860_v62, %v861_v19  ;;  %v882_v41 = vrot.slane %v881_v38, 2 }
 0x2a7   :  { %v742_v51 = vpop.permute.xlu0 %741  ;;  %v847_v54 = vrot.slane %v846_v21, 2  ;;  %v925_v40 = vsel %vm622_vm9, %v794_v18, %v924_v26  ;;  %v808_v45 = vmax.f32 %v806_v10, %v807_v30 }
 0x2a8   :  { %v833_v52 = vrot.slane %v832_v34, 2  ;;  %v728_v55 = vpop.permute.xlu1 %727  ;;  %v770_v42 = vmul.f32 %v742_v51, %v343_v44  ;;  %v863_v51 = vrot.slane %v862_v35, 1  ;;  %v926_v56 = vsel %vm624_vm10, %v801_v47, %v925_v40 }
 0x2a9   :  { %v768_v60 = vmul.f32 %v728_v55, %v342_v20  ;;  %v848_v11 = vmax.f32 %v846_v21, %v847_v54  ;;  %v815_v54 = vmax.f32 %v813_v28, %v814_v5  ;;  %v883_v55 = vmax.f32 %v881_v38, %v882_v41 }
 0x2aa   :  { %v834_v63 = vmax.f32 %v832_v34, %v833_v52  ;;  %v865_v1 = vsel %vm773_vm0, %v770_v42, -inf }
 0x2ab   :  { %v851_v7 = vsel %vm773_vm0, %v768_v60, -inf  ;;  %v866_v8 = vrot.slane %v865_v1, 4  ;;  %v849_v32 = vrot.slane %v848_v11, 1  ;;  %v927_v60 = vsel %vm626_vm11, %v808_v45, %v926_v56 }
 0x2ac   :  { %v852_v12 = vrot.slane %v851_v7, 4  ;;  %v835_v15 = vrot.slane %v834_v63, 1  ;;  %v884_v6 = vrot.slane %v883_v55, 1 }
 0x2ad   :  { %v867_v27 = vmax.f32 %v865_v1, %v866_v8  ;;  %v850_v46 = vmax.f32 %v848_v11, %v849_v32  ;;  %v864_v1 = vmax.f32 %v862_v35, %v863_v51  ;;  %v928_v8 = vsel %vm628_vm12, %v815_v54, %v927_v60 }
 0x2ae   :  { %v853_v24 = vmax.f32 %v851_v7, %v852_v12  ;;  %v836_v2 = vmax.f32 %v834_v63, %v835_v15  ;;  %v945_v12 = vpop.permute.xlu2 %944  ;;  %v885_v18 = vmax.f32 %v883_v55, %v884_v6 }
 0x2af   :  { %v700_v29 = vpop.permute.xlu0 %699  ;;  %v868_v20 = vrot.slane %v867_v27, 2 }
 0x2b0   :  { %v854_v53 = vrot.slane %v853_v24, 2  ;;  %v749_v31 = vpop.permute.xlu1 %748  ;;  %v764_v33 = vmul.f32 %v700_v29, %v340_v9  ;;  %v931_v49 = vsel %vm620_vm8, %v843_v16, %v836_v2  ;;  %v822_v9 = vmax.f32 %v820_v25, %v821_v57 }
 0x2b1   :  { %v771_v0 = vmul.f32 %v749_v31, %v1401_v4  ;;  %v869_v4 = vmax.f32 %v867_v27, %v868_v20  ;;  %v932_v58 = vsel %vm622_vm9, %v850_v46, %v931_v49 }
 0x2b2   :  { %v855_v36 = vmax.f32 %v853_v24, %v854_v53  ;;  %v823_v37 = vsel %vm773_vm0, %v764_v33, -inf  ;;  %v929_v27 = vsel %vm630_vm13, %v822_v9, %v928_v8  ;;  %v952_v24 = vmul.f32 %v945_v12, %v1273_v22 }
 0x2b3   :  { %v872_v21 = vsel %vm773_vm0, %v771_v0, -inf  ;;  %v824_v44 = vrot.slane %v823_v37, 4  ;;  %v870_v61 = vrot.slane %v869_v4, 1 }
 0x2b4   :  { %v856_v34 = vrot.slane %v855_v36, 1  ;;  %v873_v39 = vrot.slane %v872_v21, 4 }
 0x2b5   :  { %v825_v50 = vmax.f32 %v823_v37, %v824_v44  ;;  %v871_v13 = vmax.f32 %v869_v4, %v870_v61 }
 0x2b6   :  { %v857_v23 = vmax.f32 %v855_v36, %v856_v34  ;;  %v874_v52 = vmax.f32 %v872_v21, %v873_v39 }
 0x2b7   :  { %v826_v42 = vrot.slane %v825_v50, 2 }
 0x2b8   :  { %v875_v59 = vrot.slane %v874_v52, 2  ;;  %v933_v63 = vsel %vm624_vm10, %v857_v23, %v932_v58  ;;  %v906_v38 = vpop.permute.xlu0 %905 }
 0x2b9   :  { %v827_v48 = vmax.f32 %v825_v50, %v826_v42  ;;  %v901_v62 = vpop.permute.xlu1 %900  ;;  %v934_v11 = vsel %vm626_vm11, %v864_v1, %v933_v63 }
 0x2ba   :  { %v876_v3 = vmax.f32 %v874_v52, %v875_v59  ;;  %v935_v19 = vsel %vm628_vm12, %v871_v13, %v934_v11 }
 0x2bb   :  { %v828_v7 = vrot.slane %v827_v48, 1 }
 0x2bc   :  { %v877_v10 = vrot.slane %v876_v3, 1 }
 0x2bd   :  { %v829_v14 = vmax.f32 %v827_v48, %v828_v7 }
 0x2be   :  { %v878_v15 = vmax.f32 %v876_v3, %v877_v10 }
 0x2bf   :  { %v930_v17 = vsel %vm632_vm14, %v829_v14, %v929_v27 }
 0x2c0   :  { %v940_v26 = vmul.f32 %v930_v17, %v901_v62  ;;  %v936_v28 = vsel %vm630_vm13, %v878_v15, %v935_v19 }
 0x2c1   :  { %v937_v25 = vsel %vm632_vm14, %v885_v18, %v936_v28  ;;  %v950_v29 = vpop.permute.xlu1 %949 }
 0x2c2   :  { %v954_v30 = vadd.f32 %v952_v24, %v940_v26  ;;  %v941_v32 = vmul.f32 %v937_v25, %v906_v38  ;;  %v953_v53 = vmul.f32 %v950_v29, %v1291_v43  ;;  %v1111_v43 = vld [vmem:[%s1464_s2 + $0x20] ss:$0 sm:$0xff] }
 0x2c4   :  { %v955_v31 = vadd.f32 %v953_v53, %v941_v32  ;;  %v957_v33 = vsel %vm956_vm1, %v954_v30, 0.0 }
 0x2c5   :  { %v958_v16 = vrot.slane %v957_v33, 4 }
 0x2c6   :  { %v964_v2 = vsel %vm956_vm1, %v955_v31, 0.0 }
 0x2c7   :  { %v959_v20 = vadd.f32 %v958_v16, %v957_v33  ;;  %v965_v22 = vrot.slane %v964_v2, 4 }
 0x2c9   :  { %v960_v0 = vrot.slane %v959_v20, 2  ;;  %v966_v35 = vadd.f32 %v965_v22, %v964_v2 }
 0x2cb   :  { %v961_v36 = vadd.f32 %v960_v0, %v959_v20  ;;  %v967_v37 = vrot.slane %v966_v35, 2 }
 0x2cd   :  { %v962_v40 = vrot.slane %v961_v36, 1  ;;  %v968_v5 = vadd.f32 %v967_v37, %v966_v35 }
 0x2cf   :  { %v963_v41 = vadd.f32 %v962_v40, %v961_v36  ;;  %v969_v21 = vrot.slane %v968_v5, 1 }
 0x2d1   :  { %v970_v44 = vadd.f32 %v969_v21, %v968_v5 }
 0x2d3   :  { %v979_v45 = vsel %vm620_vm8, %v970_v44, %v963_v41 }
 0x2d4   :  { %1048 = vmatmul.msk.f32.vlgmr.msrb.gmra.mxu2 %vm956_vm1, %v979_v45 }
 0x357   :  { %v999_v46 = vpop.f32.mrf.mxu2 }
 0x358   :  { %v1000_v34 = vadd.f32 %v1111_v43, %v999_v46 }
 0x35a   :  { %1003 = vst.msk [vmem:[#allocation2] sm:$0x3] %vm1002_vm3, %v1000_v34 }
 0x35b   :  { %1014 = dma.vmem_to_hbm [thread:$0]  %s1010_s5, 32, %s1012_s8, [#allocation3]  }
 0x35c   :  { %1136 = dma.done.wait [#allocation3], 32  }
 0x35d   :  { %1137 = vsyncadd [#allocation3], 4294967264 }
 0x35e   :  { %1019 = vsyncpa [#allocation3], 1 }

</bundles_post_ra>
